<compile_context>
chip_gen: v5e
topology: v5e:2x2
jax: 0.10.0
libtpu: 0.0.40
codegen_flags: <defaults>
</compile_context>

<pallas_src>
import functools

import jax
import jax.numpy as jnp
from jax.experimental import pallas as pl
from jax.experimental.pallas import tpu as pltpu


def _round_up(n, m):
    return ((n + m - 1) // m) * m


def _vmem_capacity_bytes():
    try:
        return int(pltpu.get_tpu_info().vmem_capacity_bytes)
    except Exception:
        return 64 * 1024 * 1024  # conservative default (v7x per-core physical VMEM)


# --------------------------------------------------------------------------- #
# Fused path: all layers in one pallas_call, weights VMEM-resident.
# --------------------------------------------------------------------------- #
def _make_fused_kernel(n_layers, act_flags, out_pads):
    """refs = (x_ref, bias_slab_ref, w_ref_0..w_ref_{L-1}, o_ref)."""

    def kernel(x_ref, b_ref, *rest):
        o_ref = rest[-1]
        w_refs = rest[:-1]
        b_all = b_ref[...]                                # (L, max_pad_out) f32
        h = x_ref[...].astype(jnp.float32)
        for k in range(n_layers):                         # static unroll
            w = w_refs[k][...]                            # (pad_in_k, pad_out_k) bf16
            h = jnp.dot(h.astype(jnp.bfloat16), w,        # bf16 MXU, f32 accum
                        preferred_element_type=jnp.float32)
            h = h + b_all[k, :out_pads[k]]                # f32 bias add
            if act_flags[k]:
                h = jnp.maximum(h, 0.0)                   # torch.relu (f32 VPU)
        o_ref[...] = h.astype(o_ref.dtype)

    return kernel


# --------------------------------------------------------------------------- #
# Fallback path: weights too large to be VMEM-resident -> stream each layer's
# weight over its output columns, one pallas_call per layer.
# --------------------------------------------------------------------------- #
def _pick_col_tile(dim, pref):
    """Largest multiple of 128 <= pref that divides dim (dim is a 128-multiple)."""
    t = max(128, min(pref, dim))
    t = (t // 128) * 128
    while dim % t:
        t -= 128
    return t


def _linear_layer_pallas(x_p, w_p, b_p, relu, out_dtype, vmem_cap):
    M, K = x_p.shape
    _, N = w_p.shape
    itemsize = jnp.dtype(out_dtype).itemsize
    tn = _pick_col_tile(N, 256)
    tm = min(128, _round_up(M, 8))
    m_pad = _round_up(M, tm)
    if m_pad != M:
        x_p = jnp.zeros((m_pad, K), x_p.dtype).at[:M].set(x_p)

    def kernel(x_ref, w_ref, b_ref, o_ref):
        h = jnp.dot(x_ref[...].astype(jnp.bfloat16), w_ref[...],
                    preferred_element_type=jnp.float32)
        h = h + b_ref[...]
        if relu:
            h = jnp.maximum(h, 0.0)
        o_ref[...] = h.astype(o_ref.dtype)

    est = 2 * (tm * K * itemsize + K * tn * 2 + tn * 4 + tm * tn * itemsize) + (2 << 20)
    vmem_limit = int(min(vmem_cap * 7 // 8, max(est * 5 // 4, 16 << 20)))
    out = pl.pallas_call(
        kernel,
        out_shape=jax.ShapeDtypeStruct((m_pad, N), out_dtype),
        grid=(m_pad // tm, N // tn),
        in_specs=[pl.BlockSpec((tm, K), lambda i, j: (i, 0)),
                  pl.BlockSpec((K, tn), lambda i, j: (0, j)),
                  pl.BlockSpec((1, tn), lambda i, j: (0, j))],
        out_specs=pl.BlockSpec((tm, tn), lambda i, j: (i, j)),
        compiler_params=pltpu.CompilerParams(
            dimension_semantics=("parallel", "parallel"),
            vmem_limit_bytes=vmem_limit,
        ),
    )(x_p, w_p, b_p)
    return out[:M]


def _streamed_forward(x, padded_ws, bias_slab, act_flags, out_pads,
                      n_out_true, vmem_cap):
    # TODO(synk): for extremely large contraction dims this should also tile K
    # with an accumulator grid axis; column-streaming covers wide layers.
    B, d_in = x.shape
    pad_in = padded_ws[0].shape[0]
    h = jnp.zeros((_round_up(B, 8), pad_in), x.dtype).at[:B, :d_in].set(x)
    for k, w in enumerate(padded_ws):
        b_k = bias_slab[k:k + 1, :out_pads[k]]
        h = _linear_layer_pallas(h, w, b_k, act_flags[k], x.dtype, vmem_cap)
    return h[:B, :n_out_true]


# --------------------------------------------------------------------------- #
# Forward dispatcher.
# --------------------------------------------------------------------------- #
def multi_dense_forward(x, padded_ws, bias_slab, *, act_flags, out_pads,
                        n_out_true, tile_m=512):
    B, d_in = x.shape
    n_layers = len(padded_ws)
    pad_in = padded_ws[0].shape[0]
    pad_out = padded_ws[-1].shape[1]
    itemsize = jnp.dtype(x.dtype).itemsize
    row_mult = 8 if itemsize >= 4 else 16                 # bf16 I/O packs 16 sublanes

    vmem_cap = _vmem_capacity_bytes()
    budget = (vmem_cap * 3) // 4   # ~96 MiB on 128 MiB v5e/v6e, ~48 MiB on 64 MiB v7x

    # Pallas double-buffers every input by default, including the constant-index
    # resident weight/bias blocks -> count them twice.
    resident = 2 * (sum(int(w.size) * 2 for w in padded_ws)       # bf16 weights
                    + int(bias_slab.size) * 4)                    # f32 bias slab
    max_width = max([pad_in] + [int(w.shape[1]) for w in padded_ws])

    def est_bytes(tm):
        io = 2 * tm * pad_in * itemsize + 2 * tm * pad_out * itemsize  # x/out tiles (dbl-buf)
        act = 3 * tm * max_width * 4            # live f32 h + bf16 dot input + f32 acc
        return resident + io + act + (2 << 20)  # Mosaic internal-scratch margin

    # Batch tile: multiple of row_mult, >= 2 grid steps when the batch allows it
    # (so v7x's two TensorCores both get work), shrunk to fit the VMEM budget.
    tile_m = max(row_mult, min(tile_m, _round_up(B, row_mult)))
    tile_m = max(row_mult, min(tile_m, _round_up(pl.cdiv(B, 2), row_mult)))
    tile_m = _round_up(tile_m, row_mult)
    while tile_m > row_mult and est_bytes(tile_m) > budget:
        tile_m = _round_up(max(row_mult, tile_m // 2), row_mult)

    if est_bytes(tile_m) > budget:
        # Resident weights don't fit even at the minimum tile -> stream weights.
        return _streamed_forward(x, padded_ws, bias_slab, act_flags, out_pads,
                                 n_out_true, vmem_cap)

    vmem_limit = int(min(vmem_cap * 7 // 8,
                         max(est_bytes(tile_m) * 5 // 4, 16 << 20)))

    # Zero-pad x (rows to tile_m multiple, cols to lane-dense pad_in).
    b_pad = _round_up(B, tile_m)
    x_p = jnp.zeros((b_pad, pad_in), x.dtype).at[:B, :d_in].set(x)

    in_specs = [pl.BlockSpec((tile_m, pad_in), lambda i: (i, 0)),
                pl.BlockSpec(bias_slab.shape, lambda i: (0, 0))]     # resident slab
    for w in padded_ws:
        # Constant block index -> weight stays VMEM-resident across the grid.
        in_specs.append(pl.BlockSpec(w.shape, lambda i: (0, 0)))

    flops = 2 * b_pad * sum(int(w.shape[0]) * int(w.shape[1]) for w in padded_ws)
    bytes_accessed = (int(x_p.size) * itemsize
                      + sum(int(w.size) * 2 for w in padded_ws)
                      + int(bias_slab.size) * 4
                      + b_pad * pad_out * itemsize)

    kernel = _make_fused_kernel(n_layers, act_flags, out_pads)
    out_p = pl.pallas_call(
        kernel,
        out_shape=jax.ShapeDtypeStruct((b_pad, pad_out), x.dtype),
        grid=(b_pad // tile_m,),
        in_specs=in_specs,
        out_specs=pl.BlockSpec((tile_m, pad_out), lambda i: (i, 0)),
        compiler_params=pltpu.CompilerParams(
            dimension_semantics=("parallel",),
            vmem_limit_bytes=vmem_limit,
        ),
        cost_estimate=pl.CostEstimate(flops=flops, transcendentals=0,
                                      bytes_accessed=bytes_accessed),
    )(x_p, bias_slab, *padded_ws)

    # Only this final slice touches the non-lane-dense true output width.
    return out_p[:B, :n_out_true]


# --------------------------------------------------------------------------- #
# Module wrapper.
# --------------------------------------------------------------------------- #
class MultiDenseLayer:
    """JAX/Pallas port of the PyTorch MultiDenseLayer (activation = relu)."""

    def __init__(self, n_dim_in, n_dim_out, n_dim_hidden, n_hidden, key):
        self._n_hidden = n_hidden
        self.params = []          # unpadded f32 (W (n_in, n_out), b (n_out,)) for reference
        padded_ws, out_pads = [], []
        for k in range(n_hidden):
            n_in = n_dim_in if k == 0 else n_dim_hidden
            n_out = n_dim_out if k == n_hidden - 1 else n_dim_hidden
            key, wk, bk = jax.random.split(key, 3)
            # Deterministic init mimicking nn.Linear's uniform(-1/sqrt(n_in), 1/sqrt(n_in)).
            bound = 1.0 / float(n_in) ** 0.5
            w = jax.random.uniform(wk, (n_in, n_out), jnp.float32, -bound, bound)
            b = jax.random.uniform(bk, (n_out,), jnp.float32, -bound, bound)
            self.params.append((w, b))
            # Zero-padded, lane-dense bf16 weight (padding propagates as exact zeros).
            p_in, p_out = _round_up(n_in, 128), _round_up(n_out, 128)
            wp = jnp.zeros((p_in, p_out), jnp.float32).at[:n_in, :n_out].set(w)
            padded_ws.append(wp.astype(jnp.bfloat16))
            out_pads.append(p_out)
        out_pads = tuple(out_pads)
        # Single resident f32 bias slab: one DMA instead of n_hidden tiny ones.
        max_pad_out = max(out_pads)
        bias_slab = jnp.zeros((n_hidden, max_pad_out), jnp.float32)
        for k, (_, b) in enumerate(self.params):
            bias_slab = bias_slab.at[k, :b.shape[0]].set(b)
        self._padded_ws = padded_ws
        self._bias_slab = bias_slab
        # ReLU on every layer except the last, with the k==0 branch taking
        # precedence (n_hidden == 1 => ReLU applied), exactly as in PyTorch.
        act_flags = tuple(True if k == 0 else (k != n_hidden - 1)
                          for k in range(n_hidden))
        self._forward = jax.jit(functools.partial(
            multi_dense_forward, act_flags=act_flags, out_pads=out_pads,
            n_out_true=n_dim_out))

    def __call__(self, x):
        return self._forward(x, self._padded_ws, self._bias_slab)


if __name__ == "__main__":
    key = jax.random.PRNGKey(0)
    key, xkey, pkey = jax.random.split(key, 3)

    batch = 8
    n_dim_in, n_dim_hidden, n_dim_out, n_hidden = 32, 64, 16, 3

    x = jax.random.normal(xkey, (batch, n_dim_in), jnp.float32)

    model = MultiDenseLayer(n_dim_in, n_dim_out, n_dim_hidden, n_hidden, pkey)
    out = jax.block_until_ready(model(x))

    # Pure-JAX f32 reference with identical parameters & semantics.
    h = x
    for k, (w, b) in enumerate(model.params):
        h = h @ w + b
        if k == 0 or k != n_hidden - 1:
            h = jnp.maximum(h, 0.0)

    assert out.shape == (batch, n_dim_out)
    # Tolerance relaxed for bf16 weights on the MXU (f32 accumulation).
    assert jnp.allclose(out, h, atol=5e-2, rtol=5e-2), float(
        jnp.max(jnp.abs(out - h))
    )

    print("KERNEL_OK")
</pallas_src>

<mosaic_0001>
module attributes {stable_mosaic.version = 11 : i64} {
  func.func @kernel(%arg0: i32, %arg1: memref<8x128xf32, #tpu.memory_space<vmem>>, %arg2: memref<3x128xf32, #tpu.memory_space<vmem>>, %arg3: memref<128x128xbf16, #tpu.memory_space<vmem>>, %arg4: memref<128x128xbf16, #tpu.memory_space<vmem>>, %arg5: memref<128x128xbf16, #tpu.memory_space<vmem>>, %arg6: memref<8x128xf32, #tpu.memory_space<vmem>>) attributes {dimension_semantics = [#tpu.dimension_semantics<parallel>], iteration_bounds = array<i64: 1>, scalar_prefetch = 0 : i64, scratch_operands = 0 : i64, tpu.core_type = #tpu.core_type<tc>, window_params = [{transform_indices = @transform_0, window_bounds = array<i64: 8, 128>}, {pipeline_mode = #tpu.pipeline_mode<synchronous>, transform_indices = @transform_1, window_bounds = array<i64: 3, 128>}, {pipeline_mode = #tpu.pipeline_mode<synchronous>, transform_indices = @transform_2, window_bounds = array<i64: 128, 128>}, {pipeline_mode = #tpu.pipeline_mode<synchronous>, transform_indices = @transform_3, window_bounds = array<i64: 128, 128>}, {pipeline_mode = #tpu.pipeline_mode<synchronous>, transform_indices = @transform_4, window_bounds = array<i64: 128, 128>}, {transform_indices = @transform_5, window_bounds = array<i64: 8, 128>}]} {
    %c0 = arith.constant 0 : index
    %c0_0 = arith.constant 0 : index
    %0 = vector.load %arg2[%c0, %c0_0] : memref<3x128xf32, #tpu.memory_space<vmem>>, vector<3x128xf32>
    %c0_1 = arith.constant 0 : index
    %c0_2 = arith.constant 0 : index
    %1 = vector.load %arg1[%c0_1, %c0_2] : memref<8x128xf32, #tpu.memory_space<vmem>>, vector<8x128xf32>
    %c0_3 = arith.constant 0 : index
    %c0_4 = arith.constant 0 : index
    %2 = vector.load %arg3[%c0_3, %c0_4] : memref<128x128xbf16, #tpu.memory_space<vmem>>, vector<128x128xbf16>
    %3 = arith.truncf %1 : vector<8x128xf32> to vector<8x128xbf16>
    %cst = arith.constant dense<0.000000e+00> : vector<8x128xf32>
    %4 = tpu.matmul %3, %2, %cst {dimension_numbers = #tpu.dot_dimension_numbers<[1], [0], [0], [1], [0, 0, 1, 1], [], []>} : vector<8x128xbf16>, vector<128x128xbf16>, vector<8x128xf32> -> vector<8x128xf32>
    %5 = vector.extract_strided_slice %0 {offsets = [0, 0], sizes = [1, 128], strides = [1, 1]} : vector<3x128xf32> to vector<1x128xf32>
    %6 = vector.shape_cast %5 : vector<1x128xf32> to vector<128xf32>
    %7 = vector.shape_cast %6 : vector<128xf32> to vector<1x128xf32>
    %8 = vector.broadcast %7 : vector<1x128xf32> to vector<8x128xf32>
    %9 = arith.addf %4, %8 : vector<8x128xf32>
    %cst_5 = arith.constant 0.000000e+00 : f32
    %10 = vector.broadcast %cst_5 : f32 to vector<8x128xf32>
    %11 = arith.maximumf %9, %10 : vector<8x128xf32>
    %c0_6 = arith.constant 0 : index
    %c0_7 = arith.constant 0 : index
    %12 = vector.load %arg4[%c0_6, %c0_7] : memref<128x128xbf16, #tpu.memory_space<vmem>>, vector<128x128xbf16>
    %13 = arith.truncf %11 : vector<8x128xf32> to vector<8x128xbf16>
    %cst_8 = arith.constant dense<0.000000e+00> : vector<8x128xf32>
    %14 = tpu.matmul %13, %12, %cst_8 {dimension_numbers = #tpu.dot_dimension_numbers<[1], [0], [0], [1], [0, 0, 1, 1], [], []>} : vector<8x128xbf16>, vector<128x128xbf16>, vector<8x128xf32> -> vector<8x128xf32>
    %15 = vector.extract_strided_slice %0 {offsets = [1, 0], sizes = [1, 128], strides = [1, 1]} : vector<3x128xf32> to vector<1x128xf32>
    %16 = vector.shape_cast %15 : vector<1x128xf32> to vector<128xf32>
    %17 = vector.shape_cast %16 : vector<128xf32> to vector<1x128xf32>
    %18 = vector.broadcast %17 : vector<1x128xf32> to vector<8x128xf32>
    %19 = arith.addf %14, %18 : vector<8x128xf32>
    %cst_9 = arith.constant 0.000000e+00 : f32
    %20 = vector.broadcast %cst_9 : f32 to vector<8x128xf32>
    %21 = arith.maximumf %19, %20 : vector<8x128xf32>
    %c0_10 = arith.constant 0 : index
    %c0_11 = arith.constant 0 : index
    %22 = vector.load %arg5[%c0_10, %c0_11] : memref<128x128xbf16, #tpu.memory_space<vmem>>, vector<128x128xbf16>
    %23 = arith.truncf %21 : vector<8x128xf32> to vector<8x128xbf16>
    %cst_12 = arith.constant dense<0.000000e+00> : vector<8x128xf32>
    %24 = tpu.matmul %23, %22, %cst_12 {dimension_numbers = #tpu.dot_dimension_numbers<[1], [0], [0], [1], [0, 0, 1, 1], [], []>} : vector<8x128xbf16>, vector<128x128xbf16>, vector<8x128xf32> -> vector<8x128xf32>
    %25 = vector.extract_strided_slice %0 {offsets = [2, 0], sizes = [1, 128], strides = [1, 1]} : vector<3x128xf32> to vector<1x128xf32>
    %26 = vector.shape_cast %25 : vector<1x128xf32> to vector<128xf32>
    %27 = vector.shape_cast %26 : vector<128xf32> to vector<1x128xf32>
    %28 = vector.broadcast %27 : vector<1x128xf32> to vector<8x128xf32>
    %29 = arith.addf %24, %28 : vector<8x128xf32>
    %c0_13 = arith.constant 0 : index
    %c0_14 = arith.constant 0 : index
    %30 = vector.load %arg6[%c0_13, %c0_14] : memref<8x128xf32, #tpu.memory_space<vmem>>, vector<8x128xf32>
    tpu.vector_store %arg6[%c0_13, %c0_14], %29 {strides = array<i32>} : memref<8x128xf32, #tpu.memory_space<vmem>>, vector<8x128xf32>,
    return
  }
  func.func @transform_0(%arg0: i32) -> (i32, i32) {
    %c0_i32 = arith.constant 0 : i32
    %c0_i32_0 = arith.constant 0 : i32
    return %arg0, %c0_i32 : i32, i32
  }
  func.func @transform_1(%arg0: i32) -> (i32, i32) {
    %c0_i32 = arith.constant 0 : i32
    %c0_i32_0 = arith.constant 0 : i32
    %c0_i32_1 = arith.constant 0 : i32
    return %c0_i32, %c0_i32_0 : i32, i32
  }
  func.func @transform_2(%arg0: i32) -> (i32, i32) {
    %c0_i32 = arith.constant 0 : i32
    %c0_i32_0 = arith.constant 0 : i32
    %c0_i32_1 = arith.constant 0 : i32
    return %c0_i32, %c0_i32_0 : i32, i32
  }
  func.func @transform_3(%arg0: i32) -> (i32, i32) {
    %c0_i32 = arith.constant 0 : i32
    %c0_i32_0 = arith.constant 0 : i32
    %c0_i32_1 = arith.constant 0 : i32
    return %c0_i32, %c0_i32_0 : i32, i32
  }
  func.func @transform_4(%arg0: i32) -> (i32, i32) {
    %c0_i32 = arith.constant 0 : i32
    %c0_i32_0 = arith.constant 0 : i32
    %c0_i32_1 = arith.constant 0 : i32
    return %c0_i32, %c0_i32_0 : i32, i32
  }
  func.func @transform_5(%arg0: i32) -> (i32, i32) {
    %c0_i32 = arith.constant 0 : i32
    %c0_i32_0 = arith.constant 0 : i32
    return %arg0, %c0_i32 : i32, i32
  }
}

</mosaic_0001>

<bundles_post_ra>
// kernel: multi_dense_forward.1
= control target key start
LH: loop header
LB: loop body
LE: loop exit
PB: predicated region body
PF: predicated region fallthrough
CT: control target
= control target key end

     0   :  { %10 = vsyncpa [#allocation3], 0  ;;  %s610_s0 = inlined_call_operand.vmem [shape: f32[8,128], index: 0, kind: input, shape index: {}]   ;;  %s611_s1 = inlined_call_operand.vmem [shape: f32[3,128], index: 1, kind: input, shape index: {}]   ;;  %s612_s2 = inlined_call_operand.hbm [shape: bf16[128,128], index: 2, kind: input, shape index: {}]   ;;  %s613_s3 = inlined_call_operand.hbm [shape: bf16[128,128], index: 3, kind: input, shape index: {}]   ;;  %s614_s4 = inlined_call_operand.hbm [shape: bf16[128,128], index: 4, kind: input, shape index: {}]   ;;  %s615_s5 = inlined_call_operand.hbm [shape: f32[8,128], index: 5, kind: output, shape index: {}]  }
   0x1   :  { %11 = vsyncpa [#allocation6], 0 }
   0x2   :  { %12 = vsyncpa [#allocation4], 0  ;;  %s34_s20 = sshll.u32 %s613_s3, 4  ;;  %s556_s21 = smov [#allocation5]   ;;  %s35_s20 = int_to_ptr.hbm [resolvable:$true] %s34_s20 }
   0x3   :  { %s36_s22 = sshll.u32 %s556_s21, 4  ;;  %s21_s25 = sshll.u32 %s612_s2, 4  ;;  %s37_s22 = int_to_ptr.vmem [resolvable:$true] %s36_s22  ;;  %s22_s25 = int_to_ptr.hbm [resolvable:$true] %s21_s25 }
   0x4   :  { %s557_s26 = smov 64   ;;  %s558_s27 = smov 4  }
   0x5   :  { %42 = dma.hbm_to_vmem [thread:$0]  %s35_s20, 1024, %s37_s22, [#allocation6], %s557_s26, %s557_s26, %s558_s27  }
   0x6   :  { %s559_s28 = smov [#allocation2]   ;;  %s47_s7 = sshll.u32 %s614_s4, 4  ;;  %s48_s7 = int_to_ptr.hbm [resolvable:$true] %s47_s7 }
   0x7   :  { %s23_s29 = sshll.u32 %s559_s28, 4  ;;  %s560_s3 = smov [#allocation7]   ;;  %s24_s29 = int_to_ptr.vmem [resolvable:$true] %s23_s29 }
   0x8   :  { %29 = dma.hbm_to_vmem [thread:$0]  %s22_s25, 1024, %s24_s29, [#allocation3], %s557_s26, %s557_s26, %s558_s27  }
   0x9   :  { %s49_s8 = sshll.u32 %s560_s3, 4  ;;  %s50_s8 = int_to_ptr.vmem [resolvable:$true] %s49_s8 }
   0xa   :  { %55 = dma.hbm_to_vmem [thread:$0]  %s48_s7, 1024, %s50_s8, [#allocation6], %s557_s26, %s557_s26, %s558_s27  }
   0xb   :  { %550 = dma.done.wait [#allocation3], 1024  }
   0xc   :  { %551 = vsyncadd [#allocation3], 4294966272 }
   0xd   :  { %552 = dma.done.wait [#allocation6], 2048  }
   0xe   :  { %553 = vsyncadd [#allocation6], 4294965248  ;;  %v431_v0 = vld [vmem:[#allocation2 + $0x38] sm:$0xff]  ;;  %v430_v1 = vld [vmem:[#allocation2 + $0x30] sm:$0xff]  ;;  %s317_s13 = sshll.u32 %s615_s5, 4  ;;  %s318_s13 = int_to_ptr.hbm [resolvable:$true] %s317_s13 }
   0xf   :  { %136 = vmatpush.bf16.msra.mxu0 %v431_v0  ;;  %v439_v2 = vld [vmem:[#allocation5 + $0x38] sm:$0xff]  ;;  %v438_v3 = vld [vmem:[#allocation5 + $0x30] sm:$0xff]  ;;  %v429_v4 = vld [vmem:[#allocation2 + $0x28] sm:$0xff] }
  0x10   :  { %216 = vmatpush.bf16.msra.mxu1 %v439_v2  ;;  %v437_v5 = vld [vmem:[#allocation5 + $0x28] sm:$0xff]  ;;  %v428_v6 = vld [vmem:[#allocation2 + $0x20] sm:$0xff]  ;;  %v427_v8 = vld [vmem:[#allocation2 + $0x18] sm:$0xff] }
  0x11   :  { %v436_v7 = vld [vmem:[#allocation5 + $0x20] sm:$0xff]  ;;  %v435_v9 = vld [vmem:[#allocation5 + $0x18] sm:$0xff]  ;;  %v426_v10 = vld [vmem:[#allocation2 + $0x10] sm:$0xff] }
  0x12   :  { %v434_v11 = vld [vmem:[#allocation5 + $0x10] sm:$0xff]  ;;  %v425_v12 = vld [vmem:[#allocation2 + $0x8] sm:$0xff]  ;;  %v424_v13 = vld [vmem:[#allocation2] sm:$0xff] }
  0x13   :  { %137 = vmatpush.bf16.msra.mxu0 %v430_v1  ;;  %v69_v14 = vld [vmem:[%s610_s0] sm:$0xff]  ;;  %v433_v16 = vld [vmem:[#allocation5 + $0x8] sm:$0xff]  ;;  %v447_v18 = vld [vmem:[#allocation7 + $0x38] sm:$0xff]  ;;  %s561_s0 = smov [#allocation8]  }
  0x14   :  { %217 = vmatpush.bf16.msra.mxu1 %v438_v3  ;;  %v86_v15 = vpack.c.bf16 %v69_v14, %v69_v14  ;;  %v432_v17 = vld [vmem:[#allocation5] sm:$0xff]  ;;  %296 = vmatpush.bf16.msra.mxu2 %v447_v18  ;;  %v446_v19 = vld [vmem:[#allocation7 + $0x30] sm:$0xff]  ;;  %v445_v20 = vld [vmem:[#allocation7 + $0x28] sm:$0xff] }
  0x15   :  { %v444_v21 = vld [vmem:[#allocation7 + $0x20] sm:$0xff]  ;;  %v443_v22 = vld [vmem:[#allocation7 + $0x18] sm:$0xff]  ;;  %v442_v24 = vld [vmem:[#allocation7 + $0x10] sm:$0xff] }
  0x16   :  { %v68_v23 = vld [vmem:[%s611_s1] sm:$0x7]  ;;  %v441_v31 = vld [vmem:[#allocation7 + $0x8] sm:$0xff]  ;;  %s315_s1 = sshll.u32 %s561_s0, 4  ;;  %s316_s1 = int_to_ptr.vmem [resolvable:$true] %s315_s1 }
  0x17   :  { %138 = vmatpush.bf16.msra.mxu0 %v429_v4  ;;  %v87_v25 = vperm.slane %v68_v23, 0  ;;  %v440_v32 = vld [vmem:[#allocation7] sm:$0xff]  ;;  %v167_v33 = vperm.slane %v68_v23, 1  ;;  %v247_v39 = vperm.slane %v68_v23, 2 }
  0x18   :  { %218 = vmatpush.bf16.msra.mxu1 %v437_v5  ;;  %297 = vmatpush.bf16.msra.mxu2 %v446_v19 }
  0x1b   :  { %139 = vmatpush.bf16.msra.mxu0 %v428_v6 }
  0x1c   :  { %219 = vmatpush.bf16.msra.mxu1 %v436_v7  ;;  %298 = vmatpush.bf16.msra.mxu2 %v445_v20 }
  0x1f   :  { %140 = vmatpush.bf16.msra.mxu0 %v427_v8 }
  0x20   :  { %220 = vmatpush.bf16.msra.mxu1 %v435_v9  ;;  %299 = vmatpush.bf16.msra.mxu2 %v444_v21 }
  0x23   :  { %141 = vmatpush.bf16.msra.mxu0 %v426_v10 }
  0x24   :  { %221 = vmatpush.bf16.msra.mxu1 %v434_v11  ;;  %300 = vmatpush.bf16.msra.mxu2 %v443_v22 }
  0x27   :  { %142 = vmatpush.bf16.msra.mxu0 %v425_v12 }
  0x28   :  { %222 = vmatpush.bf16.msra.mxu1 %v433_v16  ;;  %301 = vmatpush.bf16.msra.mxu2 %v442_v24 }
  0x2b   :  { %143 = vmatpush.bf16.msra.mxu0 %v424_v13 }
  0x2c   :  { %223 = vmatpush.bf16.msra.mxu1 %v432_v17  ;;  %302 = vmatpush.bf16.msra.mxu2 %v441_v31 }
  0x2e   :  { %144 = vmatmul.bf16.vlgmr.msra.gmra.mxu0 %v86_v15 }
  0x30   :  { %303 = vmatpush.bf16.msra.mxu2 %v440_v32 }
  0xab   :  { %v145_v26 = vpop.f32.mrf.mxu0 }
  0xac   :  { %v146_v27 = vadd.f32 %v145_v26, %v87_v25 }
  0xae   :  { %v149_v28 = vmax.f32 %v146_v27, 0.0 }
  0xb0   :  { %v166_v29 = vpack.c.bf16 %v149_v28, %v149_v28 }
  0xb2   :  { %224 = vmatmul.bf16.vlgmr.msra.gmra.mxu1 %v166_v29 }
  0xb3   :  { %v147_v30 = vpop.f32.mrf.mxu0 }
 0x12f   :  { %v225_v34 = vpop.f32.mrf.mxu1 }
 0x130   :  { %v226_v35 = vadd.f32 %v225_v34, %v167_v33 }
 0x132   :  { %v229_v36 = vmax.f32 %v226_v35, 0.0 }
 0x134   :  { %v246_v37 = vpack.c.bf16 %v229_v36, %v229_v36 }
 0x136   :  { %304 = vmatmul.bf16.vlgmr.msra.gmra.mxu2 %v246_v37 }
 0x137   :  { %v227_v38 = vpop.f32.mrf.mxu1 }
 0x1b9   :  { %v305_v40 = vpop.f32.mrf.mxu2 }
 0x1ba   :  { %v306_v41 = vadd.f32 %v305_v40, %v247_v39 }
 0x1bc   :  { %309 = vst [vmem:[#allocation8] sm:$0xff] %v306_v41 }
 0x1bd   :  { %320 = dma.vmem_to_hbm [thread:$0]  %s316_s1, 128, %s318_s13, [#allocation4]  }
 0x1c1   :  { %v307_v42 = vpop.f32.mrf.mxu2 }
 0x1c2   :  { %554 = dma.done.wait [#allocation4], 128  }
 0x1c3   :  { %555 = vsyncadd [#allocation4], 4294967168 }
 0x1c4   :  { %325 = vsyncpa [#allocation3], 1 }
 0x1c5   :  { %326 = vsyncpa [#allocation6], 1 }
 0x1c6   :  { %327 = vsyncpa [#allocation4], 1 }

</bundles_post_ra>
